<compile_context>
chip_gen: v5e
topology: v5e:2x2
jax: 0.10.0
libtpu: 0.0.40
codegen_flags: <defaults>
</compile_context>

<pallas_src>
import jax
import jax.numpy as jnp
from jax import lax
from jax.experimental import pallas as pl
from jax.experimental.pallas import tpu as pltpu

HID = 24       # self.hid_size
FC1_DIM = 12
FC2_DIM = 1


def _rnn01_kernel(x_ref, wih0_ref, whh0_ref, b0_ref,
                  wih1_ref, whh1_ref, b1_ref,
                  wfc1_ref, bfc1_ref, wfc2_ref, bfc2_ref,
                  h0_ref, o_ref, hbuf):
    seq = x_ref.shape[0]

    # ---- layer 0: hoisted input projection for ALL timesteps (one matmul) ----
    hbuf[...] = (jnp.dot(x_ref[...], wih0_ref[...],
                         preferred_element_type=jnp.float32) + b0_ref[...])

    whh0 = whh0_ref[...]

    def step_l0(t, h):
        pre = hbuf[pl.ds(t, 1), :] + jnp.dot(
            h, whh0, preferred_element_type=jnp.float32)
        h_new = jnp.tanh(pre)
        hbuf[pl.ds(t, 1), :] = h_new        # overwrite consumed proj row with h^0_t
        return h_new

    lax.fori_loop(0, seq, step_l0, h0_ref[0:1, :], unroll=True)

    # ---- layer 1: hoisted input projection over all layer-0 outputs ----
    # (inter-layer RNN dropout p=0.2 is identity at inference)
    hbuf[...] = (jnp.dot(hbuf[...], wih1_ref[...],
                         preferred_element_type=jnp.float32) + b1_ref[...])

    whh1 = whh1_ref[...]

    def step_l1(t, h):
        pre = hbuf[pl.ds(t, 1), :] + jnp.dot(
            h, whh1, preferred_element_type=jnp.float32)
        return jnp.tanh(pre)

    h_last = lax.fori_loop(0, seq, step_l1, h0_ref[1:2, :], unroll=True)

    # ---- head on the last timestep only: ReLU -> fc1 -> ReLU -> fc2 ----
    # TODO(synk): F.dropout(p=0.2) after fc1 / fc2 is stochastic; treated as identity.
    y = jnp.maximum(h_last, 0.0)
    y = jnp.dot(y, wfc1_ref[...], preferred_element_type=jnp.float32) + bfc1_ref[...]
    y = jnp.maximum(y, 0.0)
    y = jnp.dot(y, wfc2_ref[...], preferred_element_type=jnp.float32) + bfc2_ref[...]
    o_ref[...] = y.astype(o_ref.dtype)


def rnn01_forward(x, h0, params):
    """x: (1, seq, input_size) f32 (module input before permute(1,0,2));
       h0: (2, HID) f32 initial hidden state for the 2 RNN layers.
       Returns (1, 1) f32, matching PyTorch's output."""
    assert x.shape[0] == 1, "module implies batch size 1 (h0 has batch dim 1)"
    seq = x.shape[1]
    (w_ih0, w_hh0, b_ih0, b_hh0,
     w_ih1, w_hh1, b_ih1, b_hh1,
     w_fc1, b_fc1, w_fc2, b_fc2) = params

    x2d = x[0]                                  # (seq, D): permute(1,0,2) with batch=1
    wih0_t = jnp.transpose(w_ih0)               # (D, HID)
    whh0_t = jnp.transpose(w_hh0)               # (HID, HID)
    b0 = (b_ih0 + b_hh0).reshape(1, HID)
    wih1_t = jnp.transpose(w_ih1)               # (HID, HID)
    whh1_t = jnp.transpose(w_hh1)               # (HID, HID)
    b1 = (b_ih1 + b_hh1).reshape(1, HID)
    wfc1_t = jnp.transpose(w_fc1)               # (HID, 12)
    bfc1 = b_fc1.reshape(1, FC1_DIM)
    wfc2_t = jnp.transpose(w_fc2)               # (12, 1)
    bfc2 = b_fc2.reshape(1, FC2_DIM)

    vmem_spec = lambda: pl.BlockSpec(memory_space=pltpu.MemorySpace.VMEM)

    out = pl.pallas_call(
        _rnn01_kernel,
        out_shape=jax.ShapeDtypeStruct((1, FC2_DIM), jnp.float32),
        in_specs=[vmem_spec() for _ in range(12)],
        out_specs=vmem_spec(),
        scratch_shapes=[pltpu.VMEM((seq, HID), jnp.float32)],
    )(x2d, wih0_t, whh0_t, b0, wih1_t, whh1_t, b1,
      wfc1_t, bfc1, wfc2_t, bfc2, h0)
    return out


def init_params(key, input_size):
    """Deterministic init mimicking PyTorch default uniform(-k, k) ranges."""
    ks = jax.random.split(key, 12)
    k_rnn = 1.0 / jnp.sqrt(HID)
    k_fc1 = 1.0 / jnp.sqrt(HID)
    k_fc2 = 1.0 / jnp.sqrt(FC1_DIM)
    u = lambda k, shape, lim: jax.random.uniform(k, shape, jnp.float32, -lim, lim)
    # RNN layer 0
    w_ih0 = u(ks[0], (HID, input_size), k_rnn)
    w_hh0 = u(ks[1], (HID, HID), k_rnn)
    b_ih0 = u(ks[2], (HID,), k_rnn)
    b_hh0 = u(ks[3], (HID,), k_rnn)
    # RNN layer 1
    w_ih1 = u(ks[4], (HID, HID), k_rnn)
    w_hh1 = u(ks[5], (HID, HID), k_rnn)
    b_ih1 = u(ks[6], (HID,), k_rnn)
    b_hh1 = u(ks[7], (HID,), k_rnn)
    # head
    w_fc1 = u(ks[8], (FC1_DIM, HID), k_fc1)
    b_fc1 = u(ks[9], (FC1_DIM,), k_fc1)
    w_fc2 = u(ks[10], (FC2_DIM, FC1_DIM), k_fc2)
    b_fc2 = u(ks[11], (FC2_DIM,), k_fc2)
    return (w_ih0, w_hh0, b_ih0, b_hh0,
            w_ih1, w_hh1, b_ih1, b_hh1,
            w_fc1, b_fc1, w_fc2, b_fc2)


if __name__ == "__main__":
    seq, input_size = 8, 32
    key = jax.random.PRNGKey(0)
    k_x, k_h, k_p = jax.random.split(key, 3)
    x = jax.random.normal(k_x, (1, seq, input_size), dtype=jnp.float32)
    # deterministic stand-in for torch.randn(2, 1, hid_size)
    h0 = jax.random.normal(k_h, (2, HID), dtype=jnp.float32)
    params = init_params(k_p, input_size)

    y = rnn01_forward(x, h0, params)
    y = jax.block_until_ready(y)
    assert y.shape == (1, FC2_DIM), y.shape
    print("KERNEL_OK")
</pallas_src>

<mosaic_0001>
module attributes {stable_mosaic.version = 11 : i64} {
  func.func @_rnn01_kernel(%arg0: memref<8x32xf32, #tpu.memory_space<vmem>>, %arg1: memref<32x24xf32, #tpu.memory_space<vmem>>, %arg2: memref<24x24xf32, #tpu.memory_space<vmem>>, %arg3: memref<1x24xf32, #tpu.memory_space<vmem>>, %arg4: memref<24x24xf32, #tpu.memory_space<vmem>>, %arg5: memref<24x24xf32, #tpu.memory_space<vmem>>, %arg6: memref<1x24xf32, #tpu.memory_space<vmem>>, %arg7: memref<24x12xf32, #tpu.memory_space<vmem>>, %arg8: memref<1x12xf32, #tpu.memory_space<vmem>>, %arg9: memref<12x1xf32, #tpu.memory_space<vmem>>, %arg10: memref<1x1xf32, #tpu.memory_space<vmem>>, %arg11: memref<2x24xf32, #tpu.memory_space<vmem>>, %arg12: memref<1x1xf32, #tpu.memory_space<vmem>>, %arg13: memref<8x24xf32, #tpu.memory_space<vmem>>) attributes {dimension_semantics = [], scalar_prefetch = 0 : i64, scratch_operands = 1 : i64, tpu.core_type = #tpu.core_type<tc>} {
    %c0 = arith.constant 0 : index
    %c0_0 = arith.constant 0 : index
    %0 = vector.load %arg0[%c0, %c0_0] : memref<8x32xf32, #tpu.memory_space<vmem>>, vector<8x32xf32>
    %c0_1 = arith.constant 0 : index
    %c0_2 = arith.constant 0 : index
    %1 = vector.load %arg1[%c0_1, %c0_2] : memref<32x24xf32, #tpu.memory_space<vmem>>, vector<32x24xf32>
    %cst = arith.constant dense<0.000000e+00> : vector<8x24xf32>
    %2 = tpu.matmul %0, %1, %cst {dimension_numbers = #tpu.dot_dimension_numbers<[1], [0], [0], [1], [0, 0, 1, 1], [], []>} : vector<8x32xf32>, vector<32x24xf32>, vector<8x24xf32> -> vector<8x24xf32>
    %c0_3 = arith.constant 0 : index
    %c0_4 = arith.constant 0 : index
    %3 = vector.load %arg3[%c0_3, %c0_4] : memref<1x24xf32, #tpu.memory_space<vmem>>, vector<1x24xf32>
    %4 = vector.broadcast %3 : vector<1x24xf32> to vector<8x24xf32>
    %5 = arith.addf %2, %4 : vector<8x24xf32>
    %c0_5 = arith.constant 0 : index
    %c0_6 = arith.constant 0 : index
    %6 = vector.load %arg13[%c0_5, %c0_6] : memref<8x24xf32, #tpu.memory_space<vmem>>, vector<8x24xf32>
    tpu.vector_store %arg13[%c0_5, %c0_6], %5 {strides = array<i32>} : memref<8x24xf32, #tpu.memory_space<vmem>>, vector<8x24xf32>,
    %c0_7 = arith.constant 0 : index
    %c0_8 = arith.constant 0 : index
    %7 = vector.load %arg2[%c0_7, %c0_8] : memref<24x24xf32, #tpu.memory_space<vmem>>, vector<24x24xf32>
    %c0_9 = arith.constant 0 : index
    %c0_10 = arith.constant 0 : index
    %8 = vector.load %arg11[%c0_9, %c0_10] : memref<2x24xf32, #tpu.memory_space<vmem>>, vector<1x24xf32>
    %c0_i32 = arith.constant 0 : i32
    %9 = arith.index_cast %c0_i32 : i32 to index
    %c0_11 = arith.constant 0 : index
    %10 = vector.load %arg13[%9, %c0_11] : memref<8x24xf32, #tpu.memory_space<vmem>>, vector<1x24xf32>
    %cst_12 = arith.constant dense<0.000000e+00> : vector<1x24xf32>
    %11 = tpu.matmul %8, %7, %cst_12 {dimension_numbers = #tpu.dot_dimension_numbers<[1], [0], [0], [1], [0, 0, 1, 1], [], []>} : vector<1x24xf32>, vector<24x24xf32>, vector<1x24xf32> -> vector<1x24xf32>
    %12 = arith.addf %10, %11 : vector<1x24xf32>
    %13 = math.tanh %12 : vector<1x24xf32>
    %14 = arith.index_cast %c0_i32 : i32 to index
    %c0_13 = arith.constant 0 : index
    %15 = vector.load %arg13[%14, %c0_13] : memref<8x24xf32, #tpu.memory_space<vmem>>, vector<1x24xf32>
    tpu.vector_store %arg13[%14, %c0_13], %13 {strides = array<i32>} : memref<8x24xf32, #tpu.memory_space<vmem>>, vector<1x24xf32>,
    %c1_i32 = arith.constant 1 : i32
    %16 = arith.index_cast %c1_i32 : i32 to index
    %c0_14 = arith.constant 0 : index
    %17 = vector.load %arg13[%16, %c0_14] : memref<8x24xf32, #tpu.memory_space<vmem>>, vector<1x24xf32>
    %cst_15 = arith.constant dense<0.000000e+00> : vector<1x24xf32>
    %18 = tpu.matmul %13, %7, %cst_15 {dimension_numbers = #tpu.dot_dimension_numbers<[1], [0], [0], [1], [0, 0, 1, 1], [], []>} : vector<1x24xf32>, vector<24x24xf32>, vector<1x24xf32> -> vector<1x24xf32>
    %19 = arith.addf %17, %18 : vector<1x24xf32>
    %20 = math.tanh %19 : vector<1x24xf32>
    %21 = arith.index_cast %c1_i32 : i32 to index
    %c0_16 = arith.constant 0 : index
    %22 = vector.load %arg13[%21, %c0_16] : memref<8x24xf32, #tpu.memory_space<vmem>>, vector<1x24xf32>
    tpu.vector_store %arg13[%21, %c0_16], %20 {strides = array<i32>} : memref<8x24xf32, #tpu.memory_space<vmem>>, vector<1x24xf32>,
    %c2_i32 = arith.constant 2 : i32
    %23 = arith.index_cast %c2_i32 : i32 to index
    %c0_17 = arith.constant 0 : index
    %24 = vector.load %arg13[%23, %c0_17] : memref<8x24xf32, #tpu.memory_space<vmem>>, vector<1x24xf32>
    %cst_18 = arith.constant dense<0.000000e+00> : vector<1x24xf32>
    %25 = tpu.matmul %20, %7, %cst_18 {dimension_numbers = #tpu.dot_dimension_numbers<[1], [0], [0], [1], [0, 0, 1, 1], [], []>} : vector<1x24xf32>, vector<24x24xf32>, vector<1x24xf32> -> vector<1x24xf32>
    %26 = arith.addf %24, %25 : vector<1x24xf32>
    %27 = math.tanh %26 : vector<1x24xf32>
    %28 = arith.index_cast %c2_i32 : i32 to index
    %c0_19 = arith.constant 0 : index
    %29 = vector.load %arg13[%28, %c0_19] : memref<8x24xf32, #tpu.memory_space<vmem>>, vector<1x24xf32>
    tpu.vector_store %arg13[%28, %c0_19], %27 {strides = array<i32>} : memref<8x24xf32, #tpu.memory_space<vmem>>, vector<1x24xf32>,
    %c3_i32 = arith.constant 3 : i32
    %30 = arith.index_cast %c3_i32 : i32 to index
    %c0_20 = arith.constant 0 : index
    %31 = vector.load %arg13[%30, %c0_20] : memref<8x24xf32, #tpu.memory_space<vmem>>, vector<1x24xf32>
    %cst_21 = arith.constant dense<0.000000e+00> : vector<1x24xf32>
    %32 = tpu.matmul %27, %7, %cst_21 {dimension_numbers = #tpu.dot_dimension_numbers<[1], [0], [0], [1], [0, 0, 1, 1], [], []>} : vector<1x24xf32>, vector<24x24xf32>, vector<1x24xf32> -> vector<1x24xf32>
    %33 = arith.addf %31, %32 : vector<1x24xf32>
    %34 = math.tanh %33 : vector<1x24xf32>
    %35 = arith.index_cast %c3_i32 : i32 to index
    %c0_22 = arith.constant 0 : index
    %36 = vector.load %arg13[%35, %c0_22] : memref<8x24xf32, #tpu.memory_space<vmem>>, vector<1x24xf32>
    tpu.vector_store %arg13[%35, %c0_22], %34 {strides = array<i32>} : memref<8x24xf32, #tpu.memory_space<vmem>>, vector<1x24xf32>,
    %c4_i32 = arith.constant 4 : i32
    %37 = arith.index_cast %c4_i32 : i32 to index
    %c0_23 = arith.constant 0 : index
    %38 = vector.load %arg13[%37, %c0_23] : memref<8x24xf32, #tpu.memory_space<vmem>>, vector<1x24xf32>
    %cst_24 = arith.constant dense<0.000000e+00> : vector<1x24xf32>
    %39 = tpu.matmul %34, %7, %cst_24 {dimension_numbers = #tpu.dot_dimension_numbers<[1], [0], [0], [1], [0, 0, 1, 1], [], []>} : vector<1x24xf32>, vector<24x24xf32>, vector<1x24xf32> -> vector<1x24xf32>
    %40 = arith.addf %38, %39 : vector<1x24xf32>
    %41 = math.tanh %40 : vector<1x24xf32>
    %42 = arith.index_cast %c4_i32 : i32 to index
    %c0_25 = arith.constant 0 : index
    %43 = vector.load %arg13[%42, %c0_25] : memref<8x24xf32, #tpu.memory_space<vmem>>, vector<1x24xf32>
    tpu.vector_store %arg13[%42, %c0_25], %41 {strides = array<i32>} : memref<8x24xf32, #tpu.memory_space<vmem>>, vector<1x24xf32>,
    %c5_i32 = arith.constant 5 : i32
    %44 = arith.index_cast %c5_i32 : i32 to index
    %c0_26 = arith.constant 0 : index
    %45 = vector.load %arg13[%44, %c0_26] : memref<8x24xf32, #tpu.memory_space<vmem>>, vector<1x24xf32>
    %cst_27 = arith.constant dense<0.000000e+00> : vector<1x24xf32>
    %46 = tpu.matmul %41, %7, %cst_27 {dimension_numbers = #tpu.dot_dimension_numbers<[1], [0], [0], [1], [0, 0, 1, 1], [], []>} : vector<1x24xf32>, vector<24x24xf32>, vector<1x24xf32> -> vector<1x24xf32>
    %47 = arith.addf %45, %46 : vector<1x24xf32>
    %48 = math.tanh %47 : vector<1x24xf32>
    %49 = arith.index_cast %c5_i32 : i32 to index
    %c0_28 = arith.constant 0 : index
    %50 = vector.load %arg13[%49, %c0_28] : memref<8x24xf32, #tpu.memory_space<vmem>>, vector<1x24xf32>
    tpu.vector_store %arg13[%49, %c0_28], %48 {strides = array<i32>} : memref<8x24xf32, #tpu.memory_space<vmem>>, vector<1x24xf32>,
    %c6_i32 = arith.constant 6 : i32
    %51 = arith.index_cast %c6_i32 : i32 to index
    %c0_29 = arith.constant 0 : index
    %52 = vector.load %arg13[%51, %c0_29] : memref<8x24xf32, #tpu.memory_space<vmem>>, vector<1x24xf32>
    %cst_30 = arith.constant dense<0.000000e+00> : vector<1x24xf32>
    %53 = tpu.matmul %48, %7, %cst_30 {dimension_numbers = #tpu.dot_dimension_numbers<[1], [0], [0], [1], [0, 0, 1, 1], [], []>} : vector<1x24xf32>, vector<24x24xf32>, vector<1x24xf32> -> vector<1x24xf32>
    %54 = arith.addf %52, %53 : vector<1x24xf32>
    %55 = math.tanh %54 : vector<1x24xf32>
    %56 = arith.index_cast %c6_i32 : i32 to index
    %c0_31 = arith.constant 0 : index
    %57 = vector.load %arg13[%56, %c0_31] : memref<8x24xf32, #tpu.memory_space<vmem>>, vector<1x24xf32>
    tpu.vector_store %arg13[%56, %c0_31], %55 {strides = array<i32>} : memref<8x24xf32, #tpu.memory_space<vmem>>, vector<1x24xf32>,
    %c7_i32 = arith.constant 7 : i32
    %58 = arith.index_cast %c7_i32 : i32 to index
    %c0_32 = arith.constant 0 : index
    %59 = vector.load %arg13[%58, %c0_32] : memref<8x24xf32, #tpu.memory_space<vmem>>, vector<1x24xf32>
    %cst_33 = arith.constant dense<0.000000e+00> : vector<1x24xf32>
    %60 = tpu.matmul %55, %7, %cst_33 {dimension_numbers = #tpu.dot_dimension_numbers<[1], [0], [0], [1], [0, 0, 1, 1], [], []>} : vector<1x24xf32>, vector<24x24xf32>, vector<1x24xf32> -> vector<1x24xf32>
    %61 = arith.addf %59, %60 : vector<1x24xf32>
    %62 = math.tanh %61 : vector<1x24xf32>
    %63 = arith.index_cast %c7_i32 : i32 to index
    %c0_34 = arith.constant 0 : index
    %64 = vector.load %arg13[%63, %c0_34] : memref<8x24xf32, #tpu.memory_space<vmem>>, vector<1x24xf32>
    tpu.vector_store %arg13[%63, %c0_34], %62 {strides = array<i32>} : memref<8x24xf32, #tpu.memory_space<vmem>>, vector<1x24xf32>,
    %c8_i32 = arith.constant 8 : i32
    %c0_35 = arith.constant 0 : index
    %c0_36 = arith.constant 0 : index
    %65 = vector.load %arg13[%c0_35, %c0_36] : memref<8x24xf32, #tpu.memory_space<vmem>>, vector<8x24xf32>
    %c0_37 = arith.constant 0 : index
    %c0_38 = arith.constant 0 : index
    %66 = vector.load %arg4[%c0_37, %c0_38] : memref<24x24xf32, #tpu.memory_space<vmem>>, vector<24x24xf32>
    %cst_39 = arith.constant dense<0.000000e+00> : vector<8x24xf32>
    %67 = tpu.matmul %65, %66, %cst_39 {dimension_numbers = #tpu.dot_dimension_numbers<[1], [0], [0], [1], [0, 0, 1, 1], [], []>} : vector<8x24xf32>, vector<24x24xf32>, vector<8x24xf32> -> vector<8x24xf32>
    %c0_40 = arith.constant 0 : index
    %c0_41 = arith.constant 0 : index
    %68 = vector.load %arg6[%c0_40, %c0_41] : memref<1x24xf32, #tpu.memory_space<vmem>>, vector<1x24xf32>
    %69 = vector.broadcast %68 : vector<1x24xf32> to vector<8x24xf32>
    %70 = arith.addf %67, %69 : vector<8x24xf32>
    %c0_42 = arith.constant 0 : index
    %c0_43 = arith.constant 0 : index
    %71 = vector.load %arg13[%c0_42, %c0_43] : memref<8x24xf32, #tpu.memory_space<vmem>>, vector<8x24xf32>
    tpu.vector_store %arg13[%c0_42, %c0_43], %70 {strides = array<i32>} : memref<8x24xf32, #tpu.memory_space<vmem>>, vector<8x24xf32>,
    %c0_44 = arith.constant 0 : index
    %c0_45 = arith.constant 0 : index
    %72 = vector.load %arg5[%c0_44, %c0_45] : memref<24x24xf32, #tpu.memory_space<vmem>>, vector<24x24xf32>
    %c1 = arith.constant 1 : index
    %c0_46 = arith.constant 0 : index
    %73 = vector.load %arg11[%c1, %c0_46] : memref<2x24xf32, #tpu.memory_space<vmem>>, vector<1x24xf32>
    %c0_i32_47 = arith.constant 0 : i32
    %74 = arith.index_cast %c0_i32_47 : i32 to index
    %c0_48 = arith.constant 0 : index
    %75 = vector.load %arg13[%74, %c0_48] : memref<8x24xf32, #tpu.memory_space<vmem>>, vector<1x24xf32>
    %cst_49 = arith.constant dense<0.000000e+00> : vector<1x24xf32>
    %76 = tpu.matmul %73, %72, %cst_49 {dimension_numbers = #tpu.dot_dimension_numbers<[1], [0], [0], [1], [0, 0, 1, 1], [], []>} : vector<1x24xf32>, vector<24x24xf32>, vector<1x24xf32> -> vector<1x24xf32>
    %77 = arith.addf %75, %76 : vector<1x24xf32>
    %78 = math.tanh %77 : vector<1x24xf32>
    %c1_i32_50 = arith.constant 1 : i32
    %79 = arith.index_cast %c1_i32_50 : i32 to index
    %c0_51 = arith.constant 0 : index
    %80 = vector.load %arg13[%79, %c0_51] : memref<8x24xf32, #tpu.memory_space<vmem>>, vector<1x24xf32>
    %cst_52 = arith.constant dense<0.000000e+00> : vector<1x24xf32>
    %81 = tpu.matmul %78, %72, %cst_52 {dimension_numbers = #tpu.dot_dimension_numbers<[1], [0], [0], [1], [0, 0, 1, 1], [], []>} : vector<1x24xf32>, vector<24x24xf32>, vector<1x24xf32> -> vector<1x24xf32>
    %82 = arith.addf %80, %81 : vector<1x24xf32>
    %83 = math.tanh %82 : vector<1x24xf32>
    %c2_i32_53 = arith.constant 2 : i32
    %84 = arith.index_cast %c2_i32_53 : i32 to index
    %c0_54 = arith.constant 0 : index
    %85 = vector.load %arg13[%84, %c0_54] : memref<8x24xf32, #tpu.memory_space<vmem>>, vector<1x24xf32>
    %cst_55 = arith.constant dense<0.000000e+00> : vector<1x24xf32>
    %86 = tpu.matmul %83, %72, %cst_55 {dimension_numbers = #tpu.dot_dimension_numbers<[1], [0], [0], [1], [0, 0, 1, 1], [], []>} : vector<1x24xf32>, vector<24x24xf32>, vector<1x24xf32> -> vector<1x24xf32>
    %87 = arith.addf %85, %86 : vector<1x24xf32>
    %88 = math.tanh %87 : vector<1x24xf32>
    %c3_i32_56 = arith.constant 3 : i32
    %89 = arith.index_cast %c3_i32_56 : i32 to index
    %c0_57 = arith.constant 0 : index
    %90 = vector.load %arg13[%89, %c0_57] : memref<8x24xf32, #tpu.memory_space<vmem>>, vector<1x24xf32>
    %cst_58 = arith.constant dense<0.000000e+00> : vector<1x24xf32>
    %91 = tpu.matmul %88, %72, %cst_58 {dimension_numbers = #tpu.dot_dimension_numbers<[1], [0], [0], [1], [0, 0, 1, 1], [], []>} : vector<1x24xf32>, vector<24x24xf32>, vector<1x24xf32> -> vector<1x24xf32>
    %92 = arith.addf %90, %91 : vector<1x24xf32>
    %93 = math.tanh %92 : vector<1x24xf32>
    %c4_i32_59 = arith.constant 4 : i32
    %94 = arith.index_cast %c4_i32_59 : i32 to index
    %c0_60 = arith.constant 0 : index
    %95 = vector.load %arg13[%94, %c0_60] : memref<8x24xf32, #tpu.memory_space<vmem>>, vector<1x24xf32>
    %cst_61 = arith.constant dense<0.000000e+00> : vector<1x24xf32>
    %96 = tpu.matmul %93, %72, %cst_61 {dimension_numbers = #tpu.dot_dimension_numbers<[1], [0], [0], [1], [0, 0, 1, 1], [], []>} : vector<1x24xf32>, vector<24x24xf32>, vector<1x24xf32> -> vector<1x24xf32>
    %97 = arith.addf %95, %96 : vector<1x24xf32>
    %98 = math.tanh %97 : vector<1x24xf32>
    %c5_i32_62 = arith.constant 5 : i32
    %99 = arith.index_cast %c5_i32_62 : i32 to index
    %c0_63 = arith.constant 0 : index
    %100 = vector.load %arg13[%99, %c0_63] : memref<8x24xf32, #tpu.memory_space<vmem>>, vector<1x24xf32>
    %cst_64 = arith.constant dense<0.000000e+00> : vector<1x24xf32>
    %101 = tpu.matmul %98, %72, %cst_64 {dimension_numbers = #tpu.dot_dimension_numbers<[1], [0], [0], [1], [0, 0, 1, 1], [], []>} : vector<1x24xf32>, vector<24x24xf32>, vector<1x24xf32> -> vector<1x24xf32>
    %102 = arith.addf %100, %101 : vector<1x24xf32>
    %103 = math.tanh %102 : vector<1x24xf32>
    %c6_i32_65 = arith.constant 6 : i32
    %104 = arith.index_cast %c6_i32_65 : i32 to index
    %c0_66 = arith.constant 0 : index
    %105 = vector.load %arg13[%104, %c0_66] : memref<8x24xf32, #tpu.memory_space<vmem>>, vector<1x24xf32>
    %cst_67 = arith.constant dense<0.000000e+00> : vector<1x24xf32>
    %106 = tpu.matmul %103, %72, %cst_67 {dimension_numbers = #tpu.dot_dimension_numbers<[1], [0], [0], [1], [0, 0, 1, 1], [], []>} : vector<1x24xf32>, vector<24x24xf32>, vector<1x24xf32> -> vector<1x24xf32>
    %107 = arith.addf %105, %106 : vector<1x24xf32>
    %108 = math.tanh %107 : vector<1x24xf32>
    %c7_i32_68 = arith.constant 7 : i32
    %109 = arith.index_cast %c7_i32_68 : i32 to index
    %c0_69 = arith.constant 0 : index
    %110 = vector.load %arg13[%109, %c0_69] : memref<8x24xf32, #tpu.memory_space<vmem>>, vector<1x24xf32>
    %cst_70 = arith.constant dense<0.000000e+00> : vector<1x24xf32>
    %111 = tpu.matmul %108, %72, %cst_70 {dimension_numbers = #tpu.dot_dimension_numbers<[1], [0], [0], [1], [0, 0, 1, 1], [], []>} : vector<1x24xf32>, vector<24x24xf32>, vector<1x24xf32> -> vector<1x24xf32>
    %112 = arith.addf %110, %111 : vector<1x24xf32>
    %113 = math.tanh %112 : vector<1x24xf32>
    %c8_i32_71 = arith.constant 8 : i32
    %cst_72 = arith.constant 0.000000e+00 : f32
    %114 = vector.broadcast %cst_72 : f32 to vector<1x24xf32>
    %115 = arith.maximumf %113, %114 : vector<1x24xf32>
    %c0_73 = arith.constant 0 : index
    %c0_74 = arith.constant 0 : index
    %116 = vector.load %arg7[%c0_73, %c0_74] : memref<24x12xf32, #tpu.memory_space<vmem>>, vector<24x12xf32>
    %cst_75 = arith.constant dense<0.000000e+00> : vector<1x12xf32>
    %117 = tpu.matmul %115, %116, %cst_75 {dimension_numbers = #tpu.dot_dimension_numbers<[1], [0], [0], [1], [0, 0, 1, 1], [], []>} : vector<1x24xf32>, vector<24x12xf32>, vector<1x12xf32> -> vector<1x12xf32>
    %c0_76 = arith.constant 0 : index
    %c0_77 = arith.constant 0 : index
    %118 = vector.load %arg8[%c0_76, %c0_77] : memref<1x12xf32, #tpu.memory_space<vmem>>, vector<1x12xf32>
    %119 = arith.addf %117, %118 : vector<1x12xf32>
    %cst_78 = arith.constant 0.000000e+00 : f32
    %120 = vector.broadcast %cst_78 : f32 to vector<1x12xf32>
    %121 = arith.maximumf %119, %120 : vector<1x12xf32>
    %c0_79 = arith.constant 0 : index
    %c0_80 = arith.constant 0 : index
    %122 = vector.load %arg9[%c0_79, %c0_80] : memref<12x1xf32, #tpu.memory_space<vmem>>, vector<12x1xf32>
    %cst_81 = arith.constant dense<0.000000e+00> : vector<1x1xf32>
    %123 = tpu.matmul %121, %122, %cst_81 {dimension_numbers = #tpu.dot_dimension_numbers<[1], [0], [0], [1], [0, 0, 1, 1], [], []>} : vector<1x12xf32>, vector<12x1xf32>, vector<1x1xf32> -> vector<1x1xf32>
    %c0_82 = arith.constant 0 : index
    %c0_83 = arith.constant 0 : index
    %124 = vector.load %arg10[%c0_82, %c0_83] : memref<1x1xf32, #tpu.memory_space<vmem>>, vector<1x1xf32>
    %125 = arith.addf %123, %124 : vector<1x1xf32>
    %c0_84 = arith.constant 0 : index
    %c0_85 = arith.constant 0 : index
    %126 = vector.load %arg12[%c0_84, %c0_85] : memref<1x1xf32, #tpu.memory_space<vmem>>, vector<1x1xf32>
    tpu.vector_store %arg12[%c0_84, %c0_85], %125 {strides = array<i32>} : memref<1x1xf32, #tpu.memory_space<vmem>>, vector<1x1xf32>,
    return
  }
}

</mosaic_0001>

<bundles_post_ra>
// kernel: tpu_custom_call.1
= control target key start
LH: loop header
LB: loop body
LE: loop exit
PB: predicated region body
PF: predicated region fallthrough
CT: control target
= control target key end

     0   :  { %s962_s0 = inlined_call_operand.vmem [shape: f32[8,32], index: 0, kind: input, shape index: {}]   ;;  %s963_s1 = inlined_call_operand.vmem [shape: f32[32,24], index: 1, kind: input, shape index: {}]   ;;  %s964_s2 = inlined_call_operand.vmem [shape: f32[24,24], index: 2, kind: input, shape index: {}]   ;;  %s965_s3 = inlined_call_operand.vmem [shape: f32[1,24], index: 3, kind: input, shape index: {}]   ;;  %s966_s4 = inlined_call_operand.vmem [shape: f32[24,24], index: 4, kind: input, shape index: {}]   ;;  %s967_s5 = inlined_call_operand.vmem [shape: f32[24,24], index: 5, kind: input, shape index: {}]   ;;  %s968_s6 = inlined_call_operand.hbm [shape: f32[1,24], index: 6, kind: input, shape index: {}]   ;;  %s969_s7 = inlined_call_operand.vmem [shape: f32[24,12], index: 7, kind: input, shape index: {}]   ;;  %s970_s8 = inlined_call_operand.hbm [shape: f32[1,12], index: 8, kind: input, shape index: {}]   ;;  %s971_s9 = inlined_call_operand.vmem [shape: f32[12,1], index: 9, kind: input, shape index: {}]   ;;  %s972_s10 = inlined_call_operand.<no memory space> [shape: f32[1,1], index: 10, kind: input, shape index: {}]   ;;  %s973_s11 = inlined_call_operand.vmem [shape: f32[2,24], index: 11, kind: input, shape index: {}]   ;;  %s974_s12 = inlined_call_operand.hbm [shape: f32[1,1], index: 12, kind: output, shape index: {}]  }
   0x1   :  { %v17_v0 = vstv %s972_s10 }
   0x2   :  { %18 = vst [vmem:[#allocation3] sm:$0x1] %v17_v0 }
   0x3   :  { %19 = vsyncpa [#allocation5], 0 }
   0x4   :  { %20 = vsyncpa [#allocation8], 0 }
   0x5   :  { %21 = vsyncpa [#allocation6], 0  ;;  %s39_s25 = sshll.u32 %s968_s6, 4  ;;  %s788_s26 = smov [#allocation4]   ;;  %s40_s25 = int_to_ptr.hbm [resolvable:$true] %s39_s25 }
   0x6   :  { %s41_s27 = sshll.u32 %s788_s26, 4  ;;  %s52_s30 = sshll.u32 %s970_s8, 4  ;;  %s42_s27 = int_to_ptr.vmem [resolvable:$true] %s41_s27  ;;  %s53_s30 = int_to_ptr.hbm [resolvable:$true] %s52_s30 }
   0x7   :  { %44 = dma.hbm_to_vmem [thread:$0]  %s40_s25, 16, %s42_s27, [#allocation5]  }
   0x8   :  { %s789_s13 = smov [#allocation7]  }
   0x9   :  { %s54_s10 = sshll.u32 %s789_s13, 4  ;;  %s55_s10 = int_to_ptr.vmem [resolvable:$true] %s54_s10 }
   0xa   :  { %57 = dma.hbm_to_vmem [thread:$0]  %s53_s30, 16, %s55_s10, [#allocation8]  }
   0xb   :  { %782 = dma.done.wait [#allocation5], 16  }
   0xc   :  { %783 = vsyncadd [#allocation5], 4294967280 }
   0xd   :  { %784 = dma.done.wait [#allocation8], 16  }
   0xe   :  { %785 = vsyncadd [#allocation8], 4294967280  ;;  %v76_v1 = vld [vmem:[%s963_s1 + $0x18] sm:$0xff]  ;;  %v75_v2 = vld [vmem:[%s963_s1 + $0x10] sm:$0xff]  ;;  %vm105_vm0 = vcmask 195584   ;;  %vm81_vm1 = vcmask 261120  }
   0xf   :  { %97 = vmatpush.msra.mxu0 %v76_v1  ;;  %v109_v3 = vld [vmem:[%s964_s2 + $0x10] sm:$0xff]  ;;  %v74_v4 = vld [vmem:[%s963_s1 + $0x8] sm:$0xff]  ;;  %v107_v6 = vld [vmem:[%s964_s2] sm:$0xff]  ;;  %vm137_vm2 = vcmask 188416   ;;  %vm608_vm3 = vcmask 1043456   ;;  %vm604_vm4 = vcmask 97280  }
  0x10   :  { %128 = vmatpush.msra.mxu1 %v109_v3  ;;  %v108_v5 = vld [vmem:[%s964_s2 + $0x8] sm:$0xff]  ;;  %156 = vmatpush.msra.mxu2 %v109_v3  ;;  %v73_v7 = vld [vmem:[%s963_s1] sm:$0xff]  ;;  %v331_v41 = vld [vmem:[%s966_s4 + $0x10] sm:$0xff]  ;;  %s641_s1 = sshll.u32 %s974_s12, 4  ;;  %vm632_vm5 = vcmask 0   ;;  %s642_s1 = int_to_ptr.hbm [resolvable:$true] %s641_s1 }
  0x11   :  { %98 = vmatpush.msra.mxu0 %v75_v2  ;;  %183 = vmatpush.msra.mxu3 %v109_v3  ;;  %v110_v8 = vld [vmem:[%s973_s11] sm:$0x1]  ;;  %v330_v42 = vld [vmem:[%s966_s4 + $0x8] sm:$0xff]  ;;  %v362_v44 = vld [vmem:[%s967_s5 + $0x10] sm:$0xff] }
  0x12   :  { %129 = vmatpush.msra.mxu1 %v108_v5  ;;  %157 = vmatpush.msra.mxu2 %v108_v5  ;;  %v72_v9 = vld [vmem:[%s962_s0] sm:$0xff]  ;;  %v361_v45 = vld [vmem:[%s967_s5 + $0x8] sm:$0xff] }
  0x13   :  { %99 = vmatpush.msra.mxu0 %v74_v4  ;;  %184 = vmatpush.msra.mxu3 %v108_v5  ;;  %v676_v10 = vld [vmem:[%s965_s3] ss:$0 sm:$0xff]  ;;  %v363_v47 = vld [vmem:[%s973_s11 + $0x1] sm:$0x1]  ;;  %v677_v53 = vld [vmem:[#allocation4] ss:$0 sm:$0xff] }
  0x14   :  { %130 = vmatpush.msra.mxu1 %v107_v6  ;;  %158 = vmatpush.msra.mxu2 %v107_v6  ;;  %v329_v43 = vld [vmem:[%s966_s4] sm:$0xff] }
  0x15   :  { %100 = vmatpush.msra.mxu0 %v73_v7  ;;  %653 = vmatmul.msk.f32.vlgmr.msra.gmra.mxu1 %vm105_vm0, %v110_v8  ;;  %v360_v46 = vld [vmem:[%s967_s5] sm:$0xff] }
  0x16   :  { %652 = vmatmul.msk.f32.vlgmr.msra.gmra.mxu0 %vm81_vm1, %v72_v9  ;;  %185 = vmatpush.msra.mxu3 %v107_v6 }
  0x17   :  { %210 = vmatpush.msrb.mxu1 %v109_v3  ;;  %237 = vmatpush.msrb.mxu2 %v109_v3 }
  0x18   :  { %264 = vmatpush.msrb.mxu3 %v109_v3  ;;  %291 = vmatpush.msrb.mxu0 %v109_v3 }
  0x19   :  { %211 = vmatpush.msrb.mxu1 %v108_v5  ;;  %238 = vmatpush.msrb.mxu2 %v108_v5 }
  0x1a   :  { %265 = vmatpush.msrb.mxu3 %v108_v5  ;;  %292 = vmatpush.msrb.mxu0 %v108_v5 }
  0x1b   :  { %212 = vmatpush.msrb.mxu1 %v107_v6  ;;  %239 = vmatpush.msrb.mxu2 %v107_v6 }
  0x1c   :  { %266 = vmatpush.msrb.mxu3 %v107_v6  ;;  %293 = vmatpush.msrb.mxu0 %v107_v6 }
  0x1d   :  { %318 = vmatpush.msra.mxu1 %v109_v3 }
  0x1e   :  { %407 = vmatpush.msra.mxu0 %v362_v44 }
  0x1f   :  { %319 = vmatpush.msra.mxu1 %v108_v5 }
  0x20   :  { %408 = vmatpush.msra.mxu0 %v361_v45 }
  0x21   :  { %320 = vmatpush.msra.mxu1 %v107_v6 }
  0x22   :  { %409 = vmatpush.msra.mxu0 %v360_v46 }
  0x92   :  { %v132_v13 = vpop.f32.mrf.mxu1 }
  0x93   :  { %v102_v11 = vpop.f32.mrf.mxu0 }
  0x94   :  { %v103_v12 = vadd.f32 %v676_v10, %v102_v11 }
  0x96   :  { %106 = vst.msk [vmem:[#allocation2] sm:$0xff] %vm105_vm0, %v103_v12 }
  0x9d   :  { %v111_v14 = vld [vmem:[#allocation2] sm:$0x1]  ;;  %v139_v17 = vld [vmem:[#allocation2 + $0x1] sm:$0x1]  ;;  %v166_v21 = vld [vmem:[#allocation2 + $0x2] sm:$0x1] }
  0x9e   :  { %v135_v15 = vadd.f32 %v132_v13, %v111_v14  ;;  %v193_v25 = vld [vmem:[#allocation2 + $0x3] sm:$0x1]  ;;  %v220_v29 = vld [vmem:[#allocation2 + $0x4] sm:$0x1]  ;;  %v247_v33 = vld [vmem:[#allocation2 + $0x5] sm:$0x1] }
  0x9f   :  { %v274_v37 = vld [vmem:[#allocation2 + $0x6] sm:$0x1]  ;;  %v301_v48 = vld [vmem:[#allocation2 + $0x7] sm:$0x1] }
  0xa0   :  { %678 = vtanh.f32 %v135_v15 }
  0xa6   :  { %v679_v16 = vpop.eup %678 }
  0xa7   :  { %138 = vst.msk [vmem:[#allocation2] sm:$0x1] %vm137_vm2, %v679_v16  ;;  %654 = vmatmul.msk.f32.vlgmr.msra.gmra.mxu2 %vm105_vm0, %v679_v16 }
  0xa8   :  { %352 = vmatpush.msra.mxu2 %v331_v41 }
  0xaa   :  { %353 = vmatpush.msra.mxu2 %v330_v42 }
  0xac   :  { %354 = vmatpush.msra.mxu2 %v329_v43 }
 0x12a   :  { %v160_v18 = vpop.f32.mrf.mxu2 }
 0x12b   :  { %v163_v19 = vadd.f32 %v160_v18, %v139_v17 }
 0x12d   :  { %680 = vtanh.f32 %v163_v19 }
 0x133   :  { %v681_v20 = vpop.eup %680 }
 0x134   :  { %165 = vst.msk [vmem:[#allocation2 + $0x1] sm:$0x1] %vm137_vm2, %v681_v20  ;;  %655 = vmatmul.msk.f32.vlgmr.msra.gmra.mxu3 %vm105_vm0, %v681_v20  ;;  %v575_v20 = vld [vmem:[%s969_s7 + $0x10] sm:$0xff] }
 0x135   :  { %381 = vmatpush.msra.mxu3 %v362_v44 }
 0x137   :  { %382 = vmatpush.msra.mxu3 %v361_v45 }
 0x139   :  { %383 = vmatpush.msra.mxu3 %v360_v46 }
 0x1b7   :  { %v187_v22 = vpop.f32.mrf.mxu3 }
 0x1b8   :  { %v190_v23 = vadd.f32 %v187_v22, %v166_v21  ;;  %v574_v21 = vld [vmem:[%s969_s7 + $0x8] sm:$0xff]  ;;  %v573_v22 = vld [vmem:[%s969_s7] sm:$0xff]  ;;  %s790_s7 = smov [#allocation9]  }
 0x1b9   :  { %s639_s28 = sshll.u32 %s790_s7, 4  ;;  %s640_s28 = int_to_ptr.vmem [resolvable:$true] %s639_s28 }
 0x1ba   :  { %682 = vtanh.f32 %v190_v23  ;;  %v602_v23 = vld [vmem:[%s971_s9 + $0x8] sm:$0xf] }
 0x1c0   :  { %v683_v24 = vpop.eup %682 }
 0x1c1   :  { %192 = vst.msk [vmem:[#allocation2 + $0x2] sm:$0x1] %vm137_vm2, %v683_v24  ;;  %656 = vmatmul.msk.f32.vlgmr.msrb.gmra.mxu1 %vm105_vm0, %v683_v24 }
 0x1c2   :  { %433 = vmatpush.msrb.mxu1 %v362_v44 }
 0x1c4   :  { %434 = vmatpush.msrb.mxu1 %v361_v45 }
 0x1c6   :  { %435 = vmatpush.msrb.mxu1 %v360_v46 }
 0x23e   :  { %v214_v26 = vpop.f32.mrf.mxu1 }
 0x23f   :  { %v217_v27 = vadd.f32 %v214_v26, %v193_v25 }
 0x241   :  { %684 = vtanh.f32 %v217_v27 }
 0x247   :  { %v685_v28 = vpop.eup %684 }
 0x248   :  { %219 = vst.msk [vmem:[#allocation2 + $0x3] sm:$0x1] %vm137_vm2, %v685_v28  ;;  %657 = vmatmul.msk.f32.vlgmr.msrb.gmra.mxu2 %vm105_vm0, %v685_v28 }
 0x249   :  { %459 = vmatpush.msrb.mxu2 %v362_v44 }
 0x24b   :  { %460 = vmatpush.msrb.mxu2 %v361_v45 }
 0x24d   :  { %461 = vmatpush.msrb.mxu2 %v360_v46 }
 0x2cb   :  { %v241_v30 = vpop.f32.mrf.mxu2 }
 0x2cc   :  { %v244_v31 = vadd.f32 %v241_v30, %v220_v29  ;;  %v601_v29 = vld [vmem:[%s971_s9] sm:$0xff]  ;;  %v576_v30 = vld [vmem:[#allocation7] sm:$0x1] }
 0x2ce   :  { %686 = vtanh.f32 %v244_v31 }
 0x2d4   :  { %v687_v32 = vpop.eup %686 }
 0x2d5   :  { %246 = vst.msk [vmem:[#allocation2 + $0x4] sm:$0x1] %vm137_vm2, %v687_v32  ;;  %658 = vmatmul.msk.f32.vlgmr.msrb.gmra.mxu3 %vm105_vm0, %v687_v32 }
 0x2d6   :  { %485 = vmatpush.msrb.mxu3 %v362_v44 }
 0x2d8   :  { %486 = vmatpush.msrb.mxu3 %v361_v45 }
 0x2da   :  { %487 = vmatpush.msrb.mxu3 %v360_v46 }
 0x2dd   :  { %662 = vmatmul.msk.f32.vlgmr.msra.gmra.mxu3 %vm105_vm0, %v363_v47 }
 0x2de   :  { %593 = vmatpush.msra.mxu3 %v575_v20 }
 0x2e0   :  { %594 = vmatpush.msra.mxu3 %v574_v21 }
 0x2e2   :  { %595 = vmatpush.msra.mxu3 %v573_v22 }
 0x358   :  { %v268_v34 = vpop.f32.mrf.mxu3 }
 0x359   :  { %v271_v35 = vadd.f32 %v268_v34, %v247_v33  ;;  %v603_v34 = vld [vmem:[#allocation3] sm:$0x1] }
 0x35b   :  { %688 = vtanh.f32 %v271_v35 }
 0x360   :  { %v385_v56 = vpop.f32.mrf.mxu3 }
 0x361   :  { %v689_v36 = vpop.eup %688 }
 0x362   :  { %273 = vst.msk [vmem:[#allocation2 + $0x5] sm:$0x1] %vm137_vm2, %v689_v36  ;;  %659 = vmatmul.msk.f32.vlgmr.msrb.gmra.mxu0 %vm105_vm0, %v689_v36 }
 0x363   :  { %511 = vmatpush.msrb.mxu0 %v362_v44 }
 0x365   :  { %512 = vmatpush.msrb.mxu0 %v361_v45 }
 0x367   :  { %513 = vmatpush.msrb.mxu0 %v360_v46 }
 0x3df   :  { %v295_v38 = vpop.f32.mrf.mxu0 }
 0x3e0   :  { %v298_v39 = vadd.f32 %v295_v38, %v274_v37 }
 0x3e2   :  { %690 = vtanh.f32 %v298_v39 }
 0x3e8   :  { %v691_v40 = vpop.eup %690 }
 0x3e9   :  { %300 = vst.msk [vmem:[#allocation2 + $0x6] sm:$0x1] %vm137_vm2, %v691_v40  ;;  %660 = vmatmul.msk.f32.vlgmr.msra.gmra.mxu1 %vm105_vm0, %v691_v40 }
 0x3ea   :  { %537 = vmatpush.msra.mxu1 %v362_v44 }
 0x3ec   :  { %538 = vmatpush.msra.mxu1 %v361_v45 }
 0x3ee   :  { %539 = vmatpush.msra.mxu1 %v360_v46 }
 0x466   :  { %v322_v49 = vpop.f32.mrf.mxu1 }
 0x467   :  { %v325_v50 = vadd.f32 %v322_v49, %v301_v48 }
 0x469   :  { %692 = vtanh.f32 %v325_v50 }
 0x46f   :  { %v693_v51 = vpop.eup %692 }
 0x470   :  { %327 = vst.msk [vmem:[#allocation2 + $0x7] sm:$0x1] %vm137_vm2, %v693_v51 }
 0x477   :  { %v328_v52 = vld [vmem:[#allocation2] sm:$0xff] }
 0x478   :  { %661 = vmatmul.msk.f32.vlgmr.msra.gmra.mxu2 %vm105_vm0, %v328_v52 }
 0x479   :  { %563 = vmatpush.msra.mxu2 %v362_v44 }
 0x47b   :  { %564 = vmatpush.msra.mxu2 %v361_v45 }
 0x47d   :  { %565 = vmatpush.msra.mxu2 %v360_v46 }
 0x4fb   :  { %v356_v54 = vpop.f32.mrf.mxu2 }
 0x4fc   :  { %v357_v55 = vadd.f32 %v677_v53, %v356_v54 }
 0x4fe   :  { %359 = vst.msk [vmem:[#allocation2] sm:$0xff] %vm105_vm0, %v357_v55 }
 0x505   :  { %v364_v57 = vld [vmem:[#allocation2] sm:$0x1]  ;;  %v390_v60 = vld [vmem:[#allocation2 + $0x1] sm:$0x1]  ;;  %v416_v0 = vld [vmem:[#allocation2 + $0x2] sm:$0x1] }
 0x506   :  { %v388_v58 = vadd.f32 %v385_v56, %v364_v57  ;;  %v442_v4 = vld [vmem:[#allocation2 + $0x3] sm:$0x1]  ;;  %v468_v8 = vld [vmem:[#allocation2 + $0x4] sm:$0x1]  ;;  %v494_v12 = vld [vmem:[#allocation2 + $0x5] sm:$0x1] }
 0x507   :  { %v520_v16 = vld [vmem:[#allocation2 + $0x6] sm:$0x1]  ;;  %v546_v24 = vld [vmem:[#allocation2 + $0x7] sm:$0x1] }
 0x508   :  { %694 = vtanh.f32 %v388_v58 }
 0x50e   :  { %v695_v59 = vpop.eup %694 }
 0x50f   :  { %663 = vmatmul.msk.f32.vlgmr.msra.gmra.mxu0 %vm105_vm0, %v695_v59 }
 0x510   :  { %671 = vmatpush.msk.msra.mxu0 %vm608_vm3, %v602_v23 }
 0x512   :  { %627 = vmatpush.msra.mxu0 %v601_v29 }
 0x58c   :  { %v411_v61 = vpop.f32.mrf.mxu0 }
 0x58d   :  { %v414_v62 = vadd.f32 %v411_v61, %v390_v60 }
 0x58f   :  { %696 = vtanh.f32 %v414_v62 }
 0x595   :  { %v697_v63 = vpop.eup %696 }
 0x596   :  { %664 = vmatmul.msk.f32.vlgmr.msrb.gmra.mxu1 %vm105_vm0, %v697_v63 }
 0x613   :  { %v437_v1 = vpop.f32.mrf.mxu1 }
 0x614   :  { %v440_v2 = vadd.f32 %v437_v1, %v416_v0 }
 0x616   :  { %698 = vtanh.f32 %v440_v2 }
 0x61c   :  { %v699_v3 = vpop.eup %698 }
 0x61d   :  { %665 = vmatmul.msk.f32.vlgmr.msrb.gmra.mxu2 %vm105_vm0, %v699_v3 }
 0x6a0   :  { %v463_v5 = vpop.f32.mrf.mxu2 }
 0x6a1   :  { %v466_v6 = vadd.f32 %v463_v5, %v442_v4 }
 0x6a3   :  { %700 = vtanh.f32 %v466_v6 }
 0x6a9   :  { %v701_v7 = vpop.eup %700 }
 0x6aa   :  { %666 = vmatmul.msk.f32.vlgmr.msrb.gmra.mxu3 %vm105_vm0, %v701_v7 }
 0x72d   :  { %v489_v9 = vpop.f32.mrf.mxu3 }
 0x72e   :  { %v492_v10 = vadd.f32 %v489_v9, %v468_v8 }
 0x730   :  { %702 = vtanh.f32 %v492_v10 }
 0x736   :  { %v703_v11 = vpop.eup %702 }
 0x737   :  { %667 = vmatmul.msk.f32.vlgmr.msrb.gmra.mxu0 %vm105_vm0, %v703_v11 }
 0x7b4   :  { %v515_v13 = vpop.f32.mrf.mxu0 }
 0x7b5   :  { %v518_v14 = vadd.f32 %v515_v13, %v494_v12 }
 0x7b7   :  { %704 = vtanh.f32 %v518_v14 }
 0x7bd   :  { %v705_v15 = vpop.eup %704 }
 0x7be   :  { %668 = vmatmul.msk.f32.vlgmr.msra.gmra.mxu1 %vm105_vm0, %v705_v15 }
 0x83b   :  { %v541_v17 = vpop.f32.mrf.mxu1 }
 0x83c   :  { %v544_v18 = vadd.f32 %v541_v17, %v520_v16 }
 0x83e   :  { %706 = vtanh.f32 %v544_v18 }
 0x844   :  { %v707_v19 = vpop.eup %706 }
 0x845   :  { %669 = vmatmul.msk.f32.vlgmr.msra.gmra.mxu2 %vm105_vm0, %v707_v19 }
 0x8c8   :  { %v567_v25 = vpop.f32.mrf.mxu2 }
 0x8c9   :  { %v570_v26 = vadd.f32 %v567_v25, %v546_v24 }
 0x8cb   :  { %708 = vtanh.f32 %v570_v26 }
 0x8d1   :  { %v709_v27 = vpop.eup %708 }
 0x8d2   :  { %v572_v28 = vmax.f32 %v709_v27, 0.0 }
 0x8d4   :  { %670 = vmatmul.msk.f32.vlgmr.msra.gmra.mxu3 %vm105_vm0, %v572_v28 }
 0x957   :  { %v597_v31 = vpop.f32.mrf.mxu3 }
 0x958   :  { %v598_v32 = vadd.f32 %v597_v31, %v576_v30 }
 0x95a   :  { %v600_v33 = vmax.f32 %v598_v32, 0.0 }
 0x95c   :  { %672 = vmatmul.msk.f32.vlgmr.msra.gmra.mxu0 %vm604_vm4, %v600_v33 }
 0x9d9   :  { %v629_v35 = vpop.f32.mrf.mxu0 }
 0x9da   :  { %v630_v36 = vadd.f32 %v629_v35, %v603_v34 }
 0x9dc   :  { %633 = vst.msk [vmem:[#allocation9] sm:$0x1] %vm632_vm5, %v630_v36 }
 0x9dd   :  { %644 = dma.vmem_to_hbm [thread:$0]  %s640_s28, 16, %s642_s1, [#allocation6]  }
 0x9de   :  { %786 = dma.done.wait [#allocation6], 16  }
 0x9df   :  { %787 = vsyncadd [#allocation6], 4294967280 }
 0x9e0   :  { %649 = vsyncpa [#allocation5], 1 }
 0x9e1   :  { %650 = vsyncpa [#allocation8], 1 }
 0x9e2   :  { %651 = vsyncpa [#allocation6], 1 }

</bundles_post_ra>
